<compile_context>
chip_gen: v5e
topology: v5e:2x2
jax: 0.10.0
libtpu: 0.0.40
codegen_flags: <defaults>
</compile_context>

<pallas_src>
import numpy as np

import jax
import jax.numpy as jnp
from jax import lax
from jax.experimental import pallas as pl
from jax.experimental.pallas import tpu as pltpu

THRESHOLDS = np.array(
    [2.0919, 1.5026, 1.6009, 2.1762, 2.326, 2.1743, 2.0768, 1.9951,
     2.0089, 1.9652, 2.1529, 2.5862, 2.6576, 2.5778, 2.7211, 2.59],
    dtype=np.float32,
)

_LOG50 = float(np.log(50.0))
_TARGET_BLOCK_BYTES = 4 * 1024 * 1024   # ~4 MiB per input block (x2 inputs x2 buffers = 16 MiB)


def _cdiv(a, b):
    return (a + b - 1) // b


def _round_up(a, b):
    return _cdiv(a, b) * b


# --------------------------------------------------------------------------------------
# Kernel 1: weighted MSE partial sums  (MseWight, power=50)
# --------------------------------------------------------------------------------------
def _make_mse_kernel(total_rows, ragged):
    def kernel(hmp_ref, hmg_ref, out_ref):
        tile_rows, w = hmp_ref.shape
        p = hmp_ref[...].astype(jnp.float32)        # in-kernel cast (inputs stay native dtype)
        g = hmg_ref[...].astype(jnp.float32)
        # (pred - gt)^2 * 50**gt   (50**gt == exp(gt * ln 50))
        v = (p - g) * (p - g) * jnp.exp(g * jnp.float32(_LOG50))
        if ragged:                                   # static: only emit mask when needed
            row = (pl.program_id(0) * tile_rows
                   + lax.broadcasted_iota(jnp.int32, (tile_rows, w), 0))
            v = jnp.where(row < total_rows, v, jnp.float32(0.0))
        # sublane-preserving partial reduce (tile_rows, w) -> (8, w): pure VALU vreg adds
        out_ref[...] = jnp.sum(v.reshape(tile_rows // 8, 8, w), axis=0)[None]
    return kernel


def _mse_wight_loss(hm_p, hm_g):
    assert hm_p.shape == hm_g.shape
    numel = hm_p.size
    w = hm_p.shape[-1]
    rows = numel // w

    # Free(ish) leading-dim merge of the native NCHW layout; no pad, no lane re-layout,
    # no dtype cast in the wrapper.
    p2 = hm_p.reshape(rows, w)
    g2 = hm_g.reshape(rows, w)
    if rows < 8:                                    # degenerate tiny case only
        pad = 8 - rows
        p2 = jnp.pad(p2, ((0, pad), (0, 0)))
        g2 = jnp.pad(g2, ((0, pad), (0, 0)))
        rows = 8

    itemsize = np.dtype(hm_p.dtype).itemsize
    cap = max(8, (_TARGET_BLOCK_BYTES // (w * itemsize)) // 8 * 8)
    tile_rows = int(min(cap, _round_up(rows, 8)))
    n_tiles = _cdiv(rows, tile_rows)
    ragged = (rows % tile_rows) != 0

    cost = pl.CostEstimate(
        flops=5 * numel,
        transcendentals=numel,
        bytes_accessed=2 * numel * itemsize + n_tiles * 8 * w * 4,
    )

    part = pl.pallas_call(
        _make_mse_kernel(rows, ragged),
        out_shape=jax.ShapeDtypeStruct((n_tiles, 8, w), jnp.float32),
        grid_spec=pltpu.PrefetchScalarGridSpec(
            num_scalar_prefetch=0,
            grid=(n_tiles,),
            in_specs=[
                pl.BlockSpec((tile_rows, w), lambda t: (t, 0)),
                pl.BlockSpec((tile_rows, w), lambda t: (t, 0)),
            ],
            # each grid step owns its own (1, 8, w) output block -> no carried state,
            # safe to split across TensorCores on v7x
            out_specs=pl.BlockSpec((1, 8, w), lambda t: (t, 0, 0)),
        ),
        compiler_params=pltpu.CompilerParams(
            dimension_semantics=("parallel",),
            vmem_limit_bytes=48 * 1024 * 1024),
        cost_estimate=cost,
    )(p2, g2)

    return jnp.sum(part) / jnp.float32(numel)


# --------------------------------------------------------------------------------------
# Kernel 2: RegL1Loss numerator + AngleConstraintLoss numerator (tiny, grid-less)
# --------------------------------------------------------------------------------------
def _l1_angle_kernel(pred_ref, tgt_ref, ppx_ref, ppy_ref, thr_ref, out_ref):
    g = pred_ref[...].astype(jnp.float32)            # [B, C, K]  (K on the lane axis)
    t = tgt_ref[...].astype(jnp.float32)             # [B, C, K]

    # ---- RegL1Loss numerator (sum reduction; division done in wrapper) ----
    out_ref[0] = jnp.sum(jnp.abs(g - t))

    # ---- AngleConstraintLoss numerator, batched over B ----
    K = g.shape[2]
    half = K // 2                                     # 18
    px = g[:, 0, :]                                   # [B, K]
    py = g[:, 1, :]                                   # [B, K]
    thetas = jnp.arctan2(py, px)                      # [B, K]
    th_mid = 0.5 * (thetas[:, :half] + thetas[:, half:])   # [B, 18]
    theta_i = th_mid[:, 1:17]                         # [B, 16]

    rx = ppx_ref[...].astype(jnp.float32)             # [B, 17]
    ry = ppy_ref[...].astype(jnp.float32)
    cvx = rx[:, 1:] - rx[:, :-1]                      # [B, 16]
    cvy = ry[:, 1:] - ry[:, :-1]
    betas = jnp.arctan2(cvy, cvx)                     # [B, 16]
    beta_next = jnp.concatenate([betas[:, 1:], betas[:, 15:16]], axis=1)
    beta_avg = 0.5 * (betas + beta_next) + jnp.float32(np.pi / 2)

    thr = thr_ref[...] * jnp.float32(np.pi / 180.0)   # [1, 16]
    d = beta_avg - theta_i
    diff = jnp.arctan2(jnp.sin(d), jnp.cos(d))        # normalize_angle
    li = jnp.abs(diff)
    li = li * (li > thr).astype(jnp.float32)
    out_ref[1] = jnp.sum(li)


# --------------------------------------------------------------------------------------
# Wrapper
# --------------------------------------------------------------------------------------
def uncertainty_loss_all(pr_decs, gt_batch, log_var_hm, log_var_vec, log_var_constraint):
    hm_p = pr_decs['hm']
    hm_g = gt_batch['hm']
    vec_map = pr_decs['vec_ind']                          # [B, C, H, W]
    ind = gt_batch['ind'].astype(jnp.int32)               # [B, K]
    vec_tgt = gt_batch['vec_ind']                         # [B, K, C]
    reg_mask = gt_batch['reg_mask'].astype(jnp.float32)   # [B, K]
    peak_points = pr_decs['peak_points']                  # [B, 17, 2]

    B, C, H, W = vec_map.shape

    # ---- heatmap MSE (native layout, native dtype, tiled, pipelined) ----
    hm_loss = _mse_wight_loss(hm_p, hm_g)

    # ---- feature gather (tiny B*K*C output) ----
    # TODO(synk): with C=2 lane width an in-kernel DMA/row gather is unprofitable, so the
    # gather itself is plain-JAX take_along_axis (per perf review); only the math is Pallas.
    feat = jnp.transpose(vec_map, (0, 2, 3, 1)).reshape(B, H * W, C)
    pred = jnp.take_along_axis(feat, ind[:, :, None], axis=1)   # [B, K, C]

    pred_t = jnp.transpose(pred, (0, 2, 1))    # [B, C, K]  (tiny)
    tgt_t = jnp.transpose(vec_tgt, (0, 2, 1))  # [B, C, K]
    ppx = peak_points[..., 0]                  # [B, 17]
    ppy = peak_points[..., 1]                  # [B, 17]
    thr = jnp.asarray(THRESHOLDS).reshape(1, 16)

    vmem = pl.BlockSpec(memory_space=pltpu.MemorySpace.VMEM)
    sums = pl.pallas_call(
        _l1_angle_kernel,
        out_shape=jax.ShapeDtypeStruct((2,), jnp.float32),
        in_specs=[vmem] * 5,
        out_specs=pl.BlockSpec(memory_space=pltpu.MemorySpace.SMEM),
    )(pred_t, tgt_t, ppx, ppy, thr)

    mask_sum = jnp.sum(reg_mask)
    vec_loss = sums[0] / (mask_sum + jnp.float32(1e-4))
    constraint_loss = sums[1] / jnp.float32(B * 16)

    # scalar uncertainty weighting (3 params) — trivial glue, kept in plain JAX
    raw_w = jnp.exp(-jnp.stack([log_var_hm, log_var_vec, log_var_constraint]))
    wts = jax.nn.softmax(raw_w)
    loss_dec = (wts[0] * hm_loss + 0.5 * log_var_hm
                + wts[1] * vec_loss + 0.5 * log_var_vec
                + wts[2] * constraint_loss + 0.5 * log_var_constraint)
    return loss_dec, hm_loss, vec_loss, constraint_loss


# --------------------------------------------------------------------------------------
# Pure-JAX reference mirroring the PyTorch forward, for verification.
# --------------------------------------------------------------------------------------
def reference_loss(pr_decs, gt_batch, lvh, lvv, lvc):
    hm_p = pr_decs['hm']
    hm_g = gt_batch['hm']
    hm_loss = jnp.mean((hm_p - hm_g) ** 2 * jnp.power(50.0, hm_g))

    B, C, H, W = pr_decs['vec_ind'].shape
    feat = jnp.transpose(pr_decs['vec_ind'], (0, 2, 3, 1)).reshape(B, H * W, C)
    ind = gt_batch['ind'].astype(jnp.int32)
    pred = jnp.take_along_axis(feat, ind[:, :, None], axis=1)      # [B, K, C]
    vec_loss = jnp.sum(jnp.abs(pred - gt_batch['vec_ind'])) / (jnp.sum(gt_batch['reg_mask']) + 1e-4)

    centers = pr_decs['peak_points']
    cv = centers[:, 1:, :] - centers[:, :-1, :]
    betas = jnp.arctan2(cv[:, :, 1], cv[:, :, 0])
    upper, lower = pred[:, :18], pred[:, 18:]
    tu = jnp.arctan2(upper[:, :, 1], upper[:, :, 0])
    tl = jnp.arctan2(lower[:, :, 1], lower[:, :, 0])
    thetas = (tu + tl) / 2
    thr = jnp.asarray(THRESHOLDS)
    total = 0.0
    for i in range(16):
        if i < 15:
            beta_avg = betas[:, i:i + 2].mean(axis=1) + jnp.pi / 2
        else:
            beta_avg = betas[:, i] + jnp.pi / 2
        theta_i = thetas[:, i + 1]
        d = beta_avg - theta_i
        diff = jnp.arctan2(jnp.sin(d), jnp.cos(d))
        li = jnp.abs(diff)
        li = li * (li > thr[i] * jnp.pi / 180).astype(jnp.float32)
        total = total + li.mean()
    c_loss = total / 16

    raw_w = jnp.exp(-jnp.stack([lvh, lvv, lvc]))
    w = jax.nn.softmax(raw_w)
    loss_dec = (w[0] * hm_loss + 0.5 * lvh + w[1] * vec_loss + 0.5 * lvv
                + w[2] * c_loss + 0.5 * lvc)
    return loss_dec, hm_loss, vec_loss, c_loss


if __name__ == "__main__":
    key = jax.random.PRNGKey(0)
    k1, k2, k3, k4, k5, k6, k7 = jax.random.split(key, 7)

    B, C_hm, H, W = 2, 1, 16, 16
    C_vec, K = 2, 36            # 18 upper + 18 lower directions
    N_pts = 17                  # peak points per sample

    pr_decs = {
        'hm': jax.random.uniform(k1, (B, C_hm, H, W), jnp.float32),
        'vec_ind': jax.random.normal(k2, (B, C_vec, H, W), jnp.float32),
        'peak_points': jax.random.normal(k3, (B, N_pts, 2), jnp.float32) * 4.0,
    }
    gt_batch = {
        'hm': jax.random.uniform(k4, (B, C_hm, H, W), jnp.float32),
        'ind': jax.random.randint(k5, (B, K), 0, H * W, jnp.int32),
        'vec_ind': jax.random.normal(k6, (B, K, C_vec), jnp.float32),
        'reg_mask': (jax.random.uniform(k7, (B, K)) > 0.3).astype(jnp.float32),
    }

    # deterministic parameter init (matches nn.Parameter(torch.tensor(0.0)))
    log_var_hm = jnp.float32(0.0)
    log_var_vec = jnp.float32(0.0)
    log_var_constraint = jnp.float32(0.0)

    out = jax.jit(uncertainty_loss_all)(pr_decs, gt_batch,
                                        log_var_hm, log_var_vec, log_var_constraint)
    out = jax.block_until_ready(out)

    ref = reference_loss(pr_decs, gt_batch, log_var_hm, log_var_vec, log_var_constraint)
    for a, b in zip(out, ref):
        np.testing.assert_allclose(np.asarray(a), np.asarray(b), rtol=1e-3, atol=1e-3)

    print("KERNEL_OK")
</pallas_src>

<mosaic_0001>
module attributes {stable_mosaic.version = 11 : i64} {
  func.func @kernel(%arg0: i32, %arg1: memref<32x16xf32, #tpu.memory_space<vmem>>, %arg2: memref<32x16xf32, #tpu.memory_space<vmem>>, %arg3: memref<1x8x16xf32, #tpu.memory_space<vmem>>) attributes {dimension_semantics = [#tpu.dimension_semantics<parallel>], iteration_bounds = array<i64: 1>, scalar_prefetch = 0 : i64, scratch_operands = 0 : i64, tpu.core_type = #tpu.core_type<tc>, window_params = [{transform_indices = @transform_0, window_bounds = array<i64: 32, 16>}, {transform_indices = @transform_1, window_bounds = array<i64: 32, 16>}, {transform_indices = @transform_2, window_bounds = array<i64: 1, 8, 16>}]} {
    %c0 = arith.constant 0 : index
    %c0_0 = arith.constant 0 : index
    %0 = vector.load %arg1[%c0, %c0_0] : memref<32x16xf32, #tpu.memory_space<vmem>>, vector<32x16xf32>
    %c0_1 = arith.constant 0 : index
    %c0_2 = arith.constant 0 : index
    %1 = vector.load %arg2[%c0_1, %c0_2] : memref<32x16xf32, #tpu.memory_space<vmem>>, vector<32x16xf32>
    %2 = arith.subf %0, %1 : vector<32x16xf32>
    %3 = arith.subf %0, %1 : vector<32x16xf32>
    %4 = arith.mulf %2, %3 : vector<32x16xf32>
    %cst = arith.constant 3.91202307 : f32
    %5 = vector.broadcast %cst : f32 to vector<32x16xf32>
    %6 = arith.mulf %1, %5 : vector<32x16xf32>
    %7 = math.exp %6 : vector<32x16xf32>
    %8 = arith.mulf %4, %7 : vector<32x16xf32>
    %9 = vector.shape_cast %8 : vector<32x16xf32> to vector<4x8x16xf32>
    %cst_3 = arith.constant dense<0.000000e+00> : vector<8x16xf32>
    %10 = vector.multi_reduction <add>, %9, %cst_3 [0] : vector<4x8x16xf32> to vector<8x16xf32>
    %11 = vector.shape_cast %10 : vector<8x16xf32> to vector<1x8x16xf32>
    %c0_4 = arith.constant 0 : index
    %c0_5 = arith.constant 0 : index
    %c0_6 = arith.constant 0 : index
    %12 = vector.load %arg3[%c0_4, %c0_5, %c0_6] : memref<1x8x16xf32, #tpu.memory_space<vmem>>, vector<1x8x16xf32>
    tpu.vector_store %arg3[%c0_4, %c0_5, %c0_6], %11 {strides = array<i32>} : memref<1x8x16xf32, #tpu.memory_space<vmem>>, vector<1x8x16xf32>,
    return
  }
  func.func @transform_0(%arg0: i32) -> (i32, i32) {
    %c0_i32 = arith.constant 0 : i32
    %c0_i32_0 = arith.constant 0 : i32
    return %arg0, %c0_i32 : i32, i32
  }
  func.func @transform_1(%arg0: i32) -> (i32, i32) {
    %c0_i32 = arith.constant 0 : i32
    %c0_i32_0 = arith.constant 0 : i32
    return %arg0, %c0_i32 : i32, i32
  }
  func.func @transform_2(%arg0: i32) -> (i32, i32, i32) {
    %c0_i32 = arith.constant 0 : i32
    %c0_i32_0 = arith.constant 0 : i32
    %c0_i32_1 = arith.constant 0 : i32
    return %arg0, %c0_i32, %c0_i32_0 : i32, i32, i32
  }
}

module attributes {stable_mosaic.version = 11 : i64} {
  func.func @_l1_angle_kernel(%arg0: memref<2x2x36xf32, #tpu.memory_space<vmem>>, %arg1: memref<2x2x36xf32, #tpu.memory_space<vmem>>, %arg2: memref<2x17xf32, #tpu.memory_space<vmem>>, %arg3: memref<2x17xf32, #tpu.memory_space<vmem>>, %arg4: memref<1x16xf32, #tpu.memory_space<vmem>>, %arg5: memref<2xf32, #tpu.memory_space<smem>>) attributes {dimension_semantics = [], scalar_prefetch = 0 : i64, scratch_operands = 0 : i64, tpu.core_type = #tpu.core_type<tc>} {
    %c0 = arith.constant 0 : index
    %c0_0 = arith.constant 0 : index
    %c0_1 = arith.constant 0 : index
    %0 = vector.load %arg0[%c0, %c0_0, %c0_1] : memref<2x2x36xf32, #tpu.memory_space<vmem>>, vector<2x2x36xf32>
    %c0_2 = arith.constant 0 : index
    %c0_3 = arith.constant 0 : index
    %c0_4 = arith.constant 0 : index
    %1 = vector.load %arg1[%c0_2, %c0_3, %c0_4] : memref<2x2x36xf32, #tpu.memory_space<vmem>>, vector<2x2x36xf32>
    %2 = arith.subf %0, %1 : vector<2x2x36xf32>
    %3 = math.absf %2 : vector<2x2x36xf32>
    %4 = vector.shape_cast %3 : vector<2x2x36xf32> to vector<1x2x2x36xf32>
    %cst = arith.constant dense<0.000000e+00> : vector<1xf32>
    %5 = vector.multi_reduction <add>, %4, %cst [1, 2, 3] : vector<1x2x2x36xf32> to vector<1xf32>
    %6 = vector.shape_cast %5 : vector<1xf32> to vector<1x1x1x1xf32>
    %7 = vector.extract %6[0, 0, 0, 0] : f32 from vector<1x1x1x1xf32>
    %c0_5 = arith.constant 0 : index
    %8 = memref.load %arg5[%c0_5] : memref<2xf32, #tpu.memory_space<smem>>
    memref.store %7, %arg5[%c0_5] : memref<2xf32, #tpu.memory_space<smem>>
    %9 = vector.extract_strided_slice %0 {offsets = [0, 0, 0], sizes = [2, 1, 36], strides = [1, 1, 1]} : vector<2x2x36xf32> to vector<2x1x36xf32>
    %10 = vector.shape_cast %9 : vector<2x1x36xf32> to vector<2x36xf32>
    %11 = vector.extract_strided_slice %0 {offsets = [0, 1, 0], sizes = [2, 1, 36], strides = [1, 1, 1]} : vector<2x2x36xf32> to vector<2x1x36xf32>
    %12 = vector.shape_cast %11 : vector<2x1x36xf32> to vector<2x36xf32>
    %13 = math.atan2 %12, %10 : vector<2x36xf32>
    %14 = vector.extract_strided_slice %13 {offsets = [0, 0], sizes = [2, 18], strides = [1, 1]} : vector<2x36xf32> to vector<2x18xf32>
    %15 = vector.extract_strided_slice %13 {offsets = [0, 18], sizes = [2, 18], strides = [1, 1]} : vector<2x36xf32> to vector<2x18xf32>
    %16 = arith.addf %14, %15 : vector<2x18xf32>
    %cst_6 = arith.constant 5.000000e-01 : f32
    %17 = vector.broadcast %cst_6 : f32 to vector<2x18xf32>
    %18 = arith.mulf %17, %16 : vector<2x18xf32>
    %19 = vector.extract_strided_slice %18 {offsets = [0, 1], sizes = [2, 16], strides = [1, 1]} : vector<2x18xf32> to vector<2x16xf32>
    %c0_7 = arith.constant 0 : index
    %c0_8 = arith.constant 0 : index
    %20 = vector.load %arg2[%c0_7, %c0_8] : memref<2x17xf32, #tpu.memory_space<vmem>>, vector<2x17xf32>
    %c0_9 = arith.constant 0 : index
    %c0_10 = arith.constant 0 : index
    %21 = vector.load %arg3[%c0_9, %c0_10] : memref<2x17xf32, #tpu.memory_space<vmem>>, vector<2x17xf32>
    %22 = vector.extract_strided_slice %20 {offsets = [0, 1], sizes = [2, 16], strides = [1, 1]} : vector<2x17xf32> to vector<2x16xf32>
    %23 = vector.extract_strided_slice %20 {offsets = [0, 0], sizes = [2, 16], strides = [1, 1]} : vector<2x17xf32> to vector<2x16xf32>
    %24 = arith.subf %22, %23 : vector<2x16xf32>
    %25 = vector.extract_strided_slice %21 {offsets = [0, 1], sizes = [2, 16], strides = [1, 1]} : vector<2x17xf32> to vector<2x16xf32>
    %26 = vector.extract_strided_slice %21 {offsets = [0, 0], sizes = [2, 16], strides = [1, 1]} : vector<2x17xf32> to vector<2x16xf32>
    %27 = arith.subf %25, %26 : vector<2x16xf32>
    %28 = math.atan2 %27, %24 : vector<2x16xf32>
    %29 = vector.extract_strided_slice %28 {offsets = [0, 1], sizes = [2, 15], strides = [1, 1]} : vector<2x16xf32> to vector<2x15xf32>
    %30 = vector.extract_strided_slice %28 {offsets = [0, 15], sizes = [2, 1], strides = [1, 1]} : vector<2x16xf32> to vector<2x1xf32>
    %31 = tpu.concatenate %29, %30 in 1 : vector<2x15xf32>, vector<2x1xf32> -> vector<2x16xf32>
    %32 = arith.addf %28, %31 : vector<2x16xf32>
    %cst_11 = arith.constant 5.000000e-01 : f32
    %33 = vector.broadcast %cst_11 : f32 to vector<2x16xf32>
    %34 = arith.mulf %33, %32 : vector<2x16xf32>
    %cst_12 = arith.constant 1.57079637 : f32
    %35 = vector.broadcast %cst_12 : f32 to vector<2x16xf32>
    %36 = arith.addf %34, %35 : vector<2x16xf32>
    %c0_13 = arith.constant 0 : index
    %c0_14 = arith.constant 0 : index
    %37 = vector.load %arg4[%c0_13, %c0_14] : memref<1x16xf32, #tpu.memory_space<vmem>>, vector<1x16xf32>
    %cst_15 = arith.constant 0.0174532924 : f32
    %38 = vector.broadcast %cst_15 : f32 to vector<1x16xf32>
    %39 = arith.mulf %37, %38 : vector<1x16xf32>
    %40 = arith.subf %36, %19 : vector<2x16xf32>
    %41 = math.sin %40 : vector<2x16xf32>
    %42 = math.cos %40 : vector<2x16xf32>
    %43 = math.atan2 %41, %42 : vector<2x16xf32>
    %44 = math.absf %43 : vector<2x16xf32>
    %45 = vector.broadcast %39 : vector<1x16xf32> to vector<2x16xf32>
    %46 = arith.cmpf ogt, %44, %45 : vector<2x16xf32>
    %47 = arith.extui %46 : vector<2x16xi1> to vector<2x16xi32>
    %48 = arith.sitofp %47 : vector<2x16xi32> to vector<2x16xf32>
    %49 = arith.mulf %44, %48 : vector<2x16xf32>
    %50 = vector.shape_cast %49 : vector<2x16xf32> to vector<1x2x16xf32>
    %cst_16 = arith.constant dense<0.000000e+00> : vector<1xf32>
    %51 = vector.multi_reduction <add>, %50, %cst_16 [1, 2] : vector<1x2x16xf32> to vector<1xf32>
    %52 = vector.shape_cast %51 : vector<1xf32> to vector<1x1x1xf32>
    %53 = vector.extract %52[0, 0, 0] : f32 from vector<1x1x1xf32>
    %c1 = arith.constant 1 : index
    %54 = memref.load %arg5[%c1] : memref<2xf32, #tpu.memory_space<smem>>
    memref.store %53, %arg5[%c1] : memref<2xf32, #tpu.memory_space<smem>>
    return
  }
}

</mosaic_0001>

<bundles_post_ra>
// kernel: uncertainty_loss_all.2
= control target key start
LH: loop header
LB: loop body
LE: loop exit
PB: predicated region body
PF: predicated region fallthrough
CT: control target
= control target key end

     0   :  { %7 = vsyncpa [#allocation3], 0  ;;  %s182_s0 = inlined_call_operand.hbm [shape: f32[32,16], index: 0, kind: input, shape index: {}]   ;;  %s183_s1 = inlined_call_operand.hbm [shape: f32[32,16], index: 1, kind: input, shape index: {}]   ;;  %s184_s2 = inlined_call_operand.vmem [shape: f32[1,8,16], index: 2, kind: output, shape index: {}]  }
   0x1   :  { %s13_s11 = sshll.u32 %s182_s0, 4  ;;  %s14_s11 = int_to_ptr.hbm [resolvable:$true] %s13_s11 }
   0x2   :  { %8 = vsyncpa [#allocation5], 0  ;;  %s154_s12 = smov [#allocation2]   ;;  %s26_s16 = sshll.u32 %s183_s1, 4  ;;  %s27_s16 = int_to_ptr.hbm [resolvable:$true] %s26_s16 }
   0x3   :  { %s15_s13 = sshll.u32 %s154_s12, 4  ;;  %s155_s17 = smov 128   ;;  %s16_s13 = int_to_ptr.vmem [resolvable:$true] %s15_s13 }
   0x4   :  { %s156_s18 = smov 8   ;;  %s157_s19 = smov [#allocation4]  }
   0x5   :  { %21 = dma.hbm_to_vmem [thread:$0]  %s14_s11, 512, %s16_s13, [#allocation3], %s155_s17, %s155_s17, %s156_s18  }
   0x6   :  { %s28_s20 = sshll.u32 %s157_s19, 4  ;;  %s29_s20 = int_to_ptr.vmem [resolvable:$true] %s28_s20 }
   0x7   :  { %34 = dma.hbm_to_vmem [thread:$0]  %s27_s16, 512, %s29_s20, [#allocation5], %s155_s17, %s155_s17, %s156_s18  }
   0x8   :  { %150 = dma.done.wait [#allocation3], 512  }
   0x9   :  { %151 = vsyncadd [#allocation3], 4294966784 }
   0xa   :  { %152 = dma.done.wait [#allocation5], 512  }
   0xb   :  { %153 = vsyncadd [#allocation5], 4294966784  ;;  %v43_v0 = vld [vmem:[#allocation2] sm:$0xff]  ;;  %v48_v2 = vld [vmem:[#allocation4 + $0x8] sm:$0xff]  ;;  %vm75_vm0 = vcmask 130048  }
   0xc   :  { %v47_v1 = vld [vmem:[#allocation4] sm:$0xff]  ;;  %v49_v3 = vld [vmem:[#allocation4 + $0x10] sm:$0xff]  ;;  %v50_v4 = vld [vmem:[#allocation4 + $0x18] sm:$0xff]  ;;  %v60_v6 = vmul.f32 3.912023, %v48_v2 }
   0xd   :  { %v59_v5 = vmul.f32 3.912023, %v47_v1  ;;  %v44_v7 = vld [vmem:[#allocation2 + $0x8] sm:$0xff]  ;;  %v61_v8 = vmul.f32 3.912023, %v49_v3  ;;  %v45_v10 = vld [vmem:[#allocation2 + $0x10] sm:$0xff]  ;;  %v51_v14 = vsub.f32 %v43_v0, %v47_v1 }
   0xe   :  { %v62_v9 = vmul.f32 3.912023, %v50_v4  ;;  %v65_v12 = vmul.f32 1.442695, %v60_v6  ;;  %v46_v13 = vld [vmem:[#allocation2 + $0x18] sm:$0xff]  ;;  %v52_v17 = vsub.f32 %v44_v7, %v48_v2  ;;  %v53_v18 = vsub.f32 %v45_v10, %v49_v3 }
   0xf   :  { %v63_v11 = vmul.f32 1.442695, %v59_v5  ;;  %v67_v15 = vmul.f32 1.442695, %v61_v8  ;;  %v54_v19 = vsub.f32 %v46_v13, %v50_v4  ;;  %v55_v20 = vmul.f32 %v51_v14, %v51_v14 }
  0x10   :  { %v69_v16 = vmul.f32 1.442695, %v62_v9  ;;  %v56_v21 = vmul.f32 %v52_v17, %v52_v17  ;;  %v57_v22 = vmul.f32 %v53_v18, %v53_v18 }
  0x11   :  { %94 = vpow2.f32 %v63_v11  ;;  %v58_v24 = vmul.f32 %v54_v19, %v54_v19 }
  0x12   :  { %96 = vpow2.f32 %v65_v12 }
  0x13   :  { %98 = vpow2.f32 %v67_v15 }
  0x14   :  { %100 = vpow2.f32 %v69_v16 }
  0x17   :  { %v95_v23 = vpop.eup %94 }
  0x18   :  { %v97_v25 = vpop.eup %96  ;;  %v71_v26 = vmul.f32 %v95_v23, %v55_v20 }
  0x19   :  { %v99_v27 = vpop.eup %98  ;;  %v72_v28 = vmul.f32 %v97_v25, %v56_v21 }
  0x1a   :  { %v101_v29 = vpop.eup %100  ;;  %v73_v30 = vmul.f32 %v99_v27, %v57_v22  ;;  %v76_v31 = vsel %vm75_vm0, %v71_v26, 0.0 }
  0x1b   :  { %v74_v32 = vmul.f32 %v101_v29, %v58_v24  ;;  %v77_v33 = vsel %vm75_vm0, %v72_v28, 0.0 }
  0x1c   :  { %v78_v34 = vadd.f32 %v77_v33, %v76_v31  ;;  %v79_v35 = vsel %vm75_vm0, %v73_v30, 0.0 }
  0x1d   :  { %v81_v36 = vsel %vm75_vm0, %v74_v32, 0.0 }
  0x1e   :  { %v80_v37 = vadd.f32 %v79_v35, %v78_v34 }
  0x20   :  { %v82_v38 = vadd.f32 %v81_v36, %v80_v37 }
  0x22   :  { %83 = vst.msk [vmem:[%s184_s2] sm:$0xff] %vm75_vm0, %v82_v38 }
  0x23   :  { %88 = vsyncpa [#allocation3], 1 }
  0x24   :  { %89 = vsyncpa [#allocation5], 1 }

// kernel: uncertainty_loss_all.3
= control target key start
LH: loop header
LB: loop body
LE: loop exit
PB: predicated region body
PF: predicated region fallthrough
CT: control target
= control target key end

     0   :  { %s737_s20 = smov 1   ;;  %s997_s0 = inlined_call_operand.vmem [shape: f32[2,2,36], index: 0, kind: input, shape index: {}]   ;;  %s998_s1 = inlined_call_operand.vmem [shape: f32[2,2,36], index: 1, kind: input, shape index: {}]   ;;  %s999_s2 = inlined_call_operand.vmem [shape: f32[2,17], index: 2, kind: input, shape index: {}]   ;;  %s1000_s3 = inlined_call_operand.vmem [shape: f32[2,17], index: 3, kind: input, shape index: {}]   ;;  %s1001_s4 = inlined_call_operand.vmem [shape: f32[1,16], index: 4, kind: input, shape index: {}]   ;;  %s1002_s5 = inlined_call_operand.vmem [shape: f32[2], index: 5, kind: output, shape index: {}]  }
   0x1   :  { %v182_v0 = vld [vmem:[%s999_s2] sm:$0x3] }
   0x2   :  { %185 = vrot.lane.b32.xlu0 %v182_v0, %s737_s20 }
   0x3   :  { %10 = vsyncpa [#allocation3], 0  ;;  %v183_v1 = vld [vmem:[%s1000_s3] sm:$0x3]  ;;  %v810_v36 = vld [vmem:[%s997_s0 + $0x2] sm:$0x3] }
   0x4   :  { %v813_v38 = vrot.slane %v810_v36, 7  ;;  %v816_v39 = vand.u32 2147483647, %v810_v36  ;;  %v738_v51 = vmov 0.0   ;;  %v739_v59 = vmov 0.7853982  }
   0x5   :  { %s740_s23 = smov 126   ;;  %s741_s24 = smov 127  }
   0x6   :  { %v819_v41 = vand.u32 2147483647, %v813_v38  ;;  %s680_s9 = sshll.u32 %s1002_s5, 4  ;;  %s750_s11 = smov [#allocation2]   ;;  %s681_s9 = int_to_ptr.vmem [resolvable:$true] %s680_s9 }
   0x8   :  { %v113_v43 = vmax.f32 %v819_v41, %v816_v39 }
   0xa   :  { %190 = vrot.lane.b32.xlu0 %v183_v1, %s737_s20  ;;  %vm119_vm14 = vweird.f32 %v113_v43  ;;  %v125_v53 = vand.u32 2147483648, %v113_v43  ;;  %v123_v56 = vand.u32 2147483647, %v113_v43 }
  0x74   :  { %v186_v2 = vpop.permute.xlu0 %185 }
  0x75   :  { %v789_v3 = vsub.f32 %v182_v0, %v186_v2  ;;  %v126_v0 = vor.u32 1.1754944e-38, %v125_v53  ;;  %v112_v2 = vmin.f32 %v819_v41, %v816_v39 }
  0x77   :  { %v194_v5 = vand.u32 2147483647, %v789_v3  ;;  %vm241_vm0 = vcmp.ne.f32.partialorder %v789_v3, %v789_v3  ;;  %vm237_vm10 = vcmp.lt.s32.totalorder %v789_v3, 0  ;;  %vm234_vm12 = vcmp.lt.f32.partialorder %v789_v3, 0.0 }
  0x78   :  { %v238_v52 = vsel %vm237_vm10, 3.1415927, %v738_v51  ;;  %v246_v60 = vsel %vm234_vm12, 2.3561945, %v739_v59  ;;  %vm153_vm10 = vcmp.lt.s32.totalorder %v813_v38, 0 }
  0x79   :  { %vm247_vm3 = vcmp.eq.s32.totalorder %v194_v5, inf }
  0x7c   :  { %v191_v4 = vpop.permute.xlu0 %190 }
  0x7d   :  { %v792_v6 = vsub.f32 %v183_v1, %v191_v4 }
  0x7f   :  { %v195_v7 = vand.u32 2147483647, %v792_v6  ;;  %vm242_vm1 = vcmp.ne.f32.partialorder %v792_v6, %v792_v6  ;;  %vm239_vm13 = vcmp.eq.f32.partialorder %v792_v6, 0.0  ;;  %v252_v63 = vand.u32 2147483648, %v792_v6 }
  0x80   :  { %vm799_vm2 = vmor %vm241_vm0, %vm242_vm1  ;;  %vm124_vm1 = vcmp.eq.f32.partialorder %v123_v56, 8.507059e+37 }
  0x81   :  { %v197_v9 = vmax.f32 %v194_v5, %v195_v7  ;;  %vm248_vm4 = vcmp.eq.s32.totalorder %v195_v7, inf  ;;  %v196_v19 = vmin.f32 %v194_v5, %v195_v7  ;;  %vm231_vm11 = vcmp.gt.f32.partialorder %v195_v7, %v194_v5 }
  0x82   :  { %vm803_vm5 = vmand %vm247_vm3, %vm248_vm4  ;;  %vm164_vm3 = vcmp.eq.s32.totalorder %v816_v39, inf }
  0x83   :  { %715 = vrcp.f32 %v197_v9  ;;  %v209_v14 = vand.u32 2147483648, %v197_v9  ;;  %v207_v16 = vand.u32 2147483647, %v197_v9  ;;  %vm203_vm7 = vweird.f32 %v197_v9 }
  0x84   :  { %717 = vrcp.f32 %v113_v43 }
  0x85   :  { %v210_v18 = vor.u32 1.1754944e-38, %v209_v14  ;;  %vm208_vm9 = vcmp.eq.f32.partialorder %v207_v16, 8.507059e+37 }
  0x89   :  { %v716_v11 = vpop.eup %715 }
  0x8a   :  { %v199_v12 = vmul.f32 %v716_v11, %v197_v9  ;;  %vm204_vm6 = vweird.f32 %v716_v11  ;;  %v718_v47 = vpop.eup %717 }
  0x8b   :  { %vm205_vm8 = vmor %vm203_vm7, %vm204_vm6  ;;  %v115_v50 = vmul.f32 %v718_v47, %v113_v43  ;;  %vm120_vm15 = vweird.f32 %v718_v47 }
  0x8c   :  { %v200_v13 = vsub.f32 1.0, %v199_v12  ;;  %vm121_vm0 = vmor %vm119_vm14, %vm120_vm15  ;;  %v843_v12 = vld [vmem:[%s997_s0] sm:$0x3]  ;;  %vm155_vm14 = vcmp.eq.f32.partialorder %v810_v36, 0.0  ;;  %s742_s0 = smov 110  }
  0x8d   :  { %v116_v55 = vsub.f32 1.0, %v115_v50  ;;  %v846_v14 = vrot.slane %v843_v12, 7 }
  0x8e   :  { %v201_v15 = vmul.f32 %v716_v11, %v200_v13 }
  0x8f   :  { %v117_v61 = vmul.f32 %v718_v47, %v116_v55  ;;  %v851_v16 = vand.u32 2147483647, %v846_v14 }
  0x90   :  { %v202_v17 = vadd.f32 %v716_v11, %v201_v15 }
  0x91   :  { %v118_v3 = vadd.f32 %v718_v47, %v117_v61 }
  0x92   :  { %v206_v20 = vsel %vm205_vm8, %v716_v11, %v202_v17 }
  0x93   :  { %v211_v21 = vsel %vm208_vm9, %v210_v18, %v206_v20  ;;  %v122_v5 = vsel %vm121_vm0, %v718_v47, %v118_v3  ;;  %vm147_vm9 = vcmp.gt.f32.partialorder %v816_v39, %v819_v41 }
  0x94   :  { %v212_v22 = vmul.f32 %v211_v21, %v196_v19  ;;  %v127_v7 = vsel %vm124_vm1, %v126_v0, %v122_v5  ;;  %v858_v19 = vand.u32 2147483647, %v843_v12  ;;  %vm90_vm1 = vcmp.lt.f32.partialorder %v846_v14, 0.0 }
  0x95   :  { %v128_v8 = vmul.f32 %v127_v7, %v112_v2 }
  0x96   :  { %v213_v23 = vmul.f32 %v212_v22, %v212_v22  ;;  %v53_v21 = vmax.f32 %v851_v16, %v858_v19  ;;  %vm87_vm0 = vcmp.gt.f32.partialorder %v858_v19, %v851_v16 }
  0x97   :  { %v129_v9 = vmul.f32 %v128_v8, %v128_v8 }
  0x98   :  { %v214_v24 = vmul.f32 0.002785687, %v213_v23  ;;  %719 = vrcp.f32 %v53_v21 }
  0x99   :  { %v130_v10 = vmul.f32 0.002785687, %v129_v9 }
  0x9a   :  { %v215_v25 = vadd.f32 -0.015866, %v214_v24 }
  0x9b   :  { %v131_v11 = vadd.f32 -0.015866, %v130_v10 }
  0x9c   :  { %v216_v26 = vmul.f32 %v215_v25, %v213_v23 }
  0x9d   :  { %v132_v6 = vmul.f32 %v131_v11, %v129_v9 }
  0x9e   :  { %v217_v27 = vadd.f32 0.04247222, %v216_v26  ;;  %v720_v25 = vpop.eup %719 }
  0x9f   :  { %v133_v13 = vadd.f32 0.04247222, %v132_v6  ;;  %vm60_vm6 = vweird.f32 %v720_v25 }
  0xa0   :  { %v218_v28 = vmul.f32 %v217_v27, %v213_v23  ;;  %v55_v27 = vmul.f32 %v720_v25, %v53_v21 }
  0xa1   :  { %v134_v15 = vmul.f32 %v133_v13, %v129_v9 }
  0xa2   :  { %v219_v29 = vadd.f32 -0.074975304, %v218_v28 }
  0xa3   :  { %v135_v17 = vadd.f32 -0.074975304, %v134_v15 }
  0xa4   :  { %v220_v30 = vmul.f32 %v219_v29, %v213_v23  ;;  %v56_v29 = vsub.f32 1.0, %v55_v27 }
  0xa5   :  { %v136_v20 = vmul.f32 %v135_v17, %v129_v9 }
  0xa6   :  { %v221_v31 = vadd.f32 0.1064488, %v220_v30 }
  0xa8   :  { %v222_v32 = vmul.f32 %v221_v31, %v213_v23  ;;  %v65_v31 = vand.u32 2147483648, %v53_v21 }
  0xaa   :  { %v223_v33 = vadd.f32 -0.14207031, %v222_v32  ;;  %v57_v32 = vmul.f32 %v720_v25, %v56_v29 }
  0xac   :  { %v224_v34 = vmul.f32 %v223_v33, %v213_v23  ;;  %v63_v33 = vand.u32 2147483647, %v53_v21 }
  0xae   :  { %v225_v35 = vadd.f32 0.19993454, %v224_v34  ;;  %vm64_vm8 = vcmp.eq.f32.partialorder %v63_v33, 8.507059e+37 }
  0xb0   :  { %v226_v37 = vmul.f32 %v225_v35, %v213_v23  ;;  %v66_v35 = vor.u32 1.1754944e-38, %v65_v31 }
  0xb2   :  { %v227_v40 = vadd.f32 -0.33333147, %v226_v37  ;;  %v52_v37 = vmin.f32 %v851_v16, %v858_v19 }
  0xb4   :  { %v228_v42 = vmul.f32 %v227_v40, %v213_v23  ;;  %v58_v40 = vadd.f32 %v720_v25, %v57_v32 }
  0xb6   :  { %v229_v44 = vmul.f32 %v228_v42, %v212_v22 }
  0xb8   :  { %v230_v45 = vadd.f32 %v229_v44, %v212_v22  ;;  %v137_v22 = vadd.f32 0.1064488, %v136_v20 }
  0xba   :  { %v232_v46 = vsub.f32 1.5707964, %v230_v45  ;;  %v138_v23 = vmul.f32 %v137_v22, %v129_v9 }
  0xbc   :  { %v233_v48 = vsel %vm231_vm11, %v232_v46, %v230_v45  ;;  %v139_v24 = vadd.f32 -0.14207031, %v138_v23  ;;  %vm157_vm11 = vcmp.ne.f32.partialorder %v813_v38, %v813_v38  ;;  %v102_v23 = vsel %vm90_vm1, 2.3561945, %v739_v59 }
  0xbd   :  { %v235_v49 = vsub.f32 3.1415927, %v233_v48 }
  0xbe   :  { %v140_v26 = vmul.f32 %v139_v24, %v129_v9 }
  0xbf   :  { %v236_v54 = vsel %vm234_vm12, %v235_v49, %v233_v48  ;;  %vm158_vm12 = vcmp.ne.f32.partialorder %v810_v36, %v810_v36 }
  0xc0   :  { %v240_v57 = vsel %vm239_vm13, %v238_v52, %v236_v54  ;;  %v141_v28 = vadd.f32 0.19993454, %v140_v26  ;;  %vm150_vm13 = vcmp.lt.f32.partialorder %v813_v38, 0.0  ;;  %v154_v54 = vsel %vm153_vm10, 3.1415927, %v738_v51  ;;  %vm159_vm15 = vmor %vm157_vm11, %vm158_vm12 }
  0xc1   :  { %v244_v58 = vsel %vm799_vm2, nan, %v240_v57  ;;  %vm163_vm2 = vcmp.eq.s32.totalorder %v819_v41, inf  ;;  %v162_v55 = vsel %vm150_vm13, 2.3561945, %v739_v59  ;;  %v108_v26 = vand.u32 2147483648, %v843_v12 }
  0xc2   :  { %v250_v62 = vsel %vm803_vm5, %v246_v60, %v244_v58  ;;  %vm853_vm4 = vmand %vm163_vm2, %vm164_vm3  ;;  %v142_v30 = vmul.f32 %v141_v28, %v129_v9  ;;  %vm59_vm5 = vweird.f32 %v53_v21  ;;  %v168_v60 = vand.u32 2147483648, %v810_v36 }
  0xc3   :  { %v251_v1 = vand.u32 2147483647, %v250_v62  ;;  %vm61_vm7 = vmor %vm59_vm5, %vm60_vm6  ;;  %vm93_vm2 = vcmp.lt.s32.totalorder %v846_v14, 0  ;;  %vm95_vm3 = vcmp.eq.f32.partialorder %v843_v12, 0.0  ;;  %vm98_vm5 = vcmp.ne.f32.partialorder %v843_v12, %v843_v12 }
  0xc4   :  { %v143_v34 = vadd.f32 -0.33333147, %v142_v30  ;;  %v62_v43 = vsel %vm61_vm7, %v720_v25, %v58_v40  ;;  %v94_v21 = vsel %vm93_vm2, 3.1415927, %v738_v51  ;;  %vm103_vm6 = vcmp.eq.s32.totalorder %v851_v16, inf }
  0xc5   :  { %v835_v4 = vor.u32 %v252_v63, %v251_v1  ;;  %v67_v45 = vsel %vm64_vm8, %v66_v35, %v62_v43  ;;  %vm104_vm7 = vcmp.eq.s32.totalorder %v858_v19, inf  ;;  %vm261_vm10 = vcmask 121856  }
  0xc6   :  { %v144_v42 = vmul.f32 %v143_v34, %v129_v9  ;;  %v68_v46 = vmul.f32 %v67_v45, %v52_v37  ;;  %vm275_vm11 = vcmask 1041409  }
  0xc7   :  { %255 = vrot.lane.b32.xlu1 %v835_v4, %s740_s23 }
  0xc8   :  { %v145_v44 = vmul.f32 %v144_v42, %v128_v8  ;;  %v69_v48 = vmul.f32 %v68_v46, %v68_v46 }
  0xca   :  { %v146_v47 = vadd.f32 %v145_v44, %v128_v8  ;;  %v70_v50 = vmul.f32 0.002785687, %v69_v48 }
  0xcc   :  { %v148_v49 = vsub.f32 1.5707964, %v146_v47  ;;  %v71_v39 = vadd.f32 -0.015866, %v70_v50 }
  0xce   :  { %v149_v52 = vsel %vm147_vm9, %v148_v49, %v146_v47  ;;  %v72_v56 = vmul.f32 %v71_v39, %v69_v48  ;;  %vm105_vm9 = vmand %vm103_vm6, %vm104_vm7 }
  0xcf   :  { %258 = vrot.lane.b32.xlu1 %v835_v4, %s741_s24  ;;  %v151_v53 = vsub.f32 3.1415927, %v149_v52 }
  0xd0   :  { %v73_v61 = vadd.f32 0.04247222, %v72_v56  ;;  %v743_v56 = vmov 683565275  }
  0xd1   :  { %v152_v41 = vsel %vm150_vm13, %v151_v53, %v149_v52 }
  0xd2   :  { %v156_v57 = vsel %vm155_vm14, %v154_v54, %v152_v41  ;;  %v74_v63 = vmul.f32 %v73_v61, %v69_v48 }
  0xd3   :  { %v160_v58 = vsel %vm159_vm15, nan, %v156_v57 }
  0xd4   :  { %v166_v62 = vsel %vm853_vm4, %v162_v55, %v160_v58  ;;  %v75_v1 = vadd.f32 -0.074975304, %v74_v63  ;;  %vm97_vm4 = vcmp.ne.f32.partialorder %v846_v14, %v846_v14  ;;  %v744_v58 = vmov 2475754826  }
  0xd5   :  { %v167_v38 = vand.u32 2147483647, %v166_v62  ;;  %vm99_vm8 = vmor %vm97_vm4, %vm98_vm5  ;;  %v745_v62 = vmov 2131351028  }
  0xd6   :  { %v76_v2 = vmul.f32 %v75_v1, %v69_v48 }
  0xd7   :  { %v169_v0 = vor.u32 %v168_v60, %v167_v38 }
  0xd8   :  { %v77_v3 = vadd.f32 0.1064488, %v76_v2 }
  0xd9   :  { %174 = vrot.lane.b32.xlu0 %v169_v0, %s742_s0 }
  0xda   :  { %v78_v5 = vmul.f32 %v77_v3, %v69_v48  ;;  %v747_v3 = vmov 920167782  }
  0xdc   :  { %v79_v7 = vadd.f32 -0.14207031, %v78_v5 }
  0xde   :  { %v80_v8 = vmul.f32 %v79_v7, %v69_v48 }
  0xe0   :  { %v81_v9 = vadd.f32 0.19993454, %v80_v8  ;;  %v748_v8 = vmov 1326507024  }
  0xe2   :  { %v82_v10 = vmul.f32 %v81_v9, %v69_v48 }
  0xe4   :  { %v83_v11 = vadd.f32 -0.33333147, %v82_v10 }
  0xe6   :  { %v84_v6 = vmul.f32 %v83_v11, %v69_v48 }
  0xe8   :  { %v85_v13 = vmul.f32 %v84_v6, %v68_v46 }
  0xea   :  { %v86_v15 = vadd.f32 %v85_v13, %v68_v46 }
  0xec   :  { %v88_v17 = vsub.f32 1.5707964, %v86_v15 }
  0xee   :  { %v89_v18 = vsel %vm87_vm0, %v88_v17, %v86_v15 }
  0xef   :  { %v91_v20 = vsub.f32 3.1415927, %v89_v18 }
  0xf1   :  { %v92_v22 = vsel %vm90_vm1, %v91_v20, %v89_v18 }
  0xf2   :  { %v96_v24 = vsel %vm95_vm3, %v94_v21, %v92_v22 }
  0xf3   :  { %v100_v25 = vsel %vm99_vm8, nan, %v96_v24 }
  0xf4   :  { %v106_v27 = vsel %vm105_vm9, %v102_v23, %v100_v25 }
  0xf5   :  { %v107_v28 = vand.u32 2147483647, %v106_v27 }
  0xf7   :  { %v109_v29 = vor.u32 %v108_v26, %v107_v28 }
  0xf9   :  { %172 = vrot.lane.b32.xlu2 %v109_v29, %s742_s0 }
 0x139   :  { %v256_v14 = vpop.permute.xlu1 %255 }
 0x141   :  { %v259_v30 = vpop.permute.xlu1 %258 }
 0x142   :  { %v262_v16 = vsel %vm261_vm10, %v256_v14, %v259_v30 }
 0x143   :  { %264 = vrot.lane.b32.xlu2 %v262_v16, %s737_s20 }
 0x14b   :  { %v175_v32 = vpop.permute.xlu0 %174 }
 0x14c   :  { %v179_v34 = vadd.f32 %v175_v32, %v169_v0  ;;  %v746_v0 = vmov 2102212464  }
 0x14e   :  { %v181_v42 = vmul.f32 0.5, %v179_v34 }
 0x153   :  { %v173_v19 = vpop.permute.xlu2 %172 }
 0x154   :  { %v178_v31 = vadd.f32 %v173_v19, %v109_v29  ;;  %v270_v29 = vld [vmem:[%s1001_s4] sm:$0x1] }
 0x156   :  { %v180_v33 = vmul.f32 0.5, %v178_v31 }
 0x158   :  { %v274_v40 = vrot.slane %v180_v33, 1  ;;  %v271_v33 = vmul.f32 0.017453292, %v270_v29 }
 0x15a   :  { %v276_v45 = vsel %vm275_vm11, %v181_v42, %v274_v40 }
 0x19d   :  { %v265_v35 = vpop.permute.xlu2 %264 }
 0x19e   :  { %v267_v37 = vadd.f32 %v265_v35, %v835_v4 }
 0x1a0   :  { %v268_v43 = vmul.f32 0.5, %v267_v37 }
 0x1a2   :  { %v269_v44 = vadd.f32 1.5707964, %v268_v43 }
 0x1a4   :  { %v896_v46 = vsub.f32 %v269_v44, %v276_v45 }
 0x1a6   :  { %v282_v47 = vand.u32 2139095040, %v896_v46  ;;  %v279_v50 = vand.u32 2147483647, %v896_v46  ;;  %vm281_vm8 = vcmp.lt.s32.totalorder %v896_v46, 0 }
 0x1a8   :  { %v283_v48 = vshrl.u32 %v282_v47, 23  ;;  %v286_v53 = vand.u32 8388607, %v279_v50  ;;  %vm280_vm9 = vcmp.le.f32.partialorder %v279_v50, 0.7853982 }
 0x1aa   :  { %v690_v49 = vadd.s32 4294967169, %v283_v48  ;;  %v287_v41 = vor.u32 8388608, %v286_v53 }
 0x1ac   :  { %v289_v52 = vadd.s32 1, %v690_v49  ;;  %v913_v17 = vshll.u32 %v287_v41, 8  ;;  %v650_v49 = vperm.slane %v271_v33, 0 }
 0x1ae   :  { %vm290_vm12 = vcmp.gt.s32.totalorder %v289_v52, 0  ;;  %v328_v27 = vand.u32 65535, %v913_v17  ;;  %v329_v28 = vshrl.u32 %v913_v17, 16  ;;  %651 = vrot.lane.b32.xlu1 %v650_v49, %s737_s20 }
 0x1af   :  { %v291_v4 = vsel %vm290_vm12, %v289_v52, 0  ;;  %v749_v52 = vmov 0  }
 0x1b0   :  { %v293_v54 = vand.u32 31, %v291_v4  ;;  %v904_v55 = vshrl.u32 %v291_v4, 5 }
 0x1b2   :  { %v902_v39 = vsub.s32 32, %v293_v54  ;;  %v296_v57 = vshll.u32 %v743_v56, %v293_v54  ;;  %v299_v60 = vshll.u32 %v744_v58, %v293_v54  ;;  %v302_v63 = vshll.u32 %v745_v62, %v293_v54 }
 0x1b3   :  { %v305_v2 = vshll.u32 %v746_v0, %v293_v54  ;;  %v308_v7 = vshll.u32 %v747_v3, %v293_v54  ;;  %vm311_vm13 = vcmp.lt.s32.totalorder %v904_v55, 1  ;;  %vm314_vm14 = vcmp.lt.s32.totalorder %v904_v55, 4 }
 0x1b4   :  { %v297_v61 = vshrl.u32 %v744_v58, %v902_v39  ;;  %v300_v38 = vshrl.u32 %v745_v62, %v902_v39  ;;  %v303_v1 = vshrl.u32 %v746_v0, %v902_v39  ;;  %v306_v5 = vshrl.u32 %v747_v3, %v902_v39 }
 0x1b5   :  { %v309_v9 = vshrl.u32 %v748_v8, %v902_v39  ;;  %vm313_vm15 = vcmp.lt.s32.totalorder %v904_v55, 3  ;;  %vm312_vm0 = vcmp.lt.s32.totalorder %v904_v55, 2  ;;  %v295_v62 = vshrl.u32 %v743_v56, %v902_v39 }
 0x1b6   :  { %v298_v10 = vor.u32 %v297_v61, %v296_v57  ;;  %v301_v11 = vor.u32 %v300_v38, %v299_v60  ;;  %v304_v6 = vor.u32 %v303_v1, %v302_v63  ;;  %v307_v13 = vor.u32 %v306_v5, %v305_v2 }
 0x1b7   :  { %v310_v15 = vor.u32 %v309_v9, %v308_v7 }
 0x1b8   :  { %v319_v18 = vsel %vm311_vm13, %v298_v10, %v301_v11  ;;  %v323_v20 = vsel %vm311_vm13, %v301_v11, %v304_v6  ;;  %v320_v21 = vsel %vm314_vm14, %v307_v13, 920167782  ;;  %v316_v58 = vsel %vm314_vm14, %v304_v6, 2102212464 }
 0x1b9   :  { %v324_v22 = vsel %vm314_vm14, %v310_v15, 1326507024  ;;  %v321_v23 = vsel %vm313_vm15, %v304_v6, %v320_v21  ;;  %v315_v3 = vsel %vm311_vm13, %v295_v62, %v298_v10  ;;  %v317_v5 = vsel %vm313_vm15, %v301_v11, %v316_v58 }
 0x1ba   :  { %v325_v24 = vsel %vm313_vm15, %v307_v13, %v324_v22  ;;  %v322_v25 = vsel %vm312_vm0, %v319_v18, %v321_v23  ;;  %v318_v39 = vsel %vm312_vm0, %v315_v3, %v317_v5 }
 0x1bb   :  { %v326_v26 = vsel %vm312_vm0, %v323_v20, %v325_v24  ;;  %v352_v16 = vand.u32 65535, %v322_v25  ;;  %v353_v19 = vshrl.u32 %v322_v25, 16  ;;  %v372_v20 = vmul.u32 %v913_v17, %v318_v39 }
 0x1bc   :  { %v330_v14 = vand.u32 65535, %v326_v26  ;;  %v331_v30 = vshrl.u32 %v326_v26, 16  ;;  %vm422_vm0 = vweird.f32 %v896_v46 }
 0x1bd   :  { %v355_v34 = vmul.u32 %v353_v19, %v328_v27  ;;  %v356_v35 = vmul.u32 %v352_v16, %v329_v28  ;;  %v354_v43 = vmul.u32 %v352_v16, %v328_v27  ;;  %v357_v44 = vmul.u32 %v353_v19, %v329_v28 }
 0x1be   :  { %v333_v31 = vmul.u32 %v331_v30, %v328_v27  ;;  %v334_v32 = vmul.u32 %v330_v14, %v329_v28  ;;  %v332_v37 = vmul.u32 %v330_v14, %v328_v27  ;;  %v335_v42 = vmul.u32 %v331_v30, %v329_v28 }
 0x1bf   :  { %v358_v45 = vshll.u32 %v355_v34, 16  ;;  %v360_v4 = vshll.u32 %v356_v35, 16  ;;  %v359_v1 = vshrl.u32 %v355_v34, 16  ;;  %v361_v9 = vshrl.u32 %v356_v35, 16 }
 0x1c0   :  { %v336_v40 = vshll.u32 %v333_v31, 16  ;;  %v338_v47 = vshll.u32 %v334_v32, 16  ;;  %v337_v38 = vshrl.u32 %v333_v31, 16  ;;  %v339_v7 = vshrl.u32 %v334_v32, 16 }
 0x1c1   :  { %vm362_vm2 = vc.u32 %v354_v43, %v358_v45  ;;  %v364_v54 = vadd.s32 %v358_v45, %v354_v43 }
 0x1c2   :  { %vm340_vm1 = vc.u32 %v332_v37, %v336_v40  ;;  %v342_v48 = vadd.s32 %v336_v40, %v332_v37  ;;  %v363_v57 = vsel %vm362_vm2, 1, %v749_v52 }
 0x1c3   :  { %v341_v53 = vsel %vm340_vm1, 1, %v749_v52  ;;  %v365_v61 = vadd.s32 %v363_v57, %v357_v44  ;;  %vm366_vm4 = vc.u32 %v364_v54, %v360_v4  ;;  %v368_v15 = vadd.s32 %v364_v54, %v360_v4 }
 0x1c4   :  { %v343_v41 = vadd.s32 %v341_v53, %v335_v42  ;;  %vm344_vm3 = vc.u32 %v342_v48, %v338_v47  ;;  %v367_v0 = vsel %vm366_vm4, 1, %v749_v52 }
 0x1c5   :  { %v345_v60 = vsel %vm344_vm3, 1, %v749_v52  ;;  %v369_v2 = vadd.s32 %v367_v0, %v365_v61 }
 0x1c6   :  { %v347_v63 = vadd.s32 %v345_v60, %v343_v41 }
 0x1c7   :  { %v370_v6 = vadd.s32 %v369_v2, %v359_v1 }
 0x1c8   :  { %v348_v8 = vadd.s32 %v347_v63, %v337_v38 }
 0x1c9   :  { %v371_v56 = vadd.s32 %v370_v6, %v361_v9 }
 0x1ca   :  { %v349_v13 = vadd.s32 %v348_v8, %v339_v7 }
 0x1cb   :  { %v375_v18 = vadd.s32 1, %v371_v56 }
 0x1cc   :  { %vm374_vm5 = vc.u32 %v349_v13, %v368_v15  ;;  %v373_v55 = vadd.s32 %v368_v15, %v349_v13 }
 0x1cd   :  { %v376_v21 = vsel %vm374_vm5, %v375_v18, %v371_v56 }
 0x1ce   :  { %v377_v22 = vadd.s32 %v376_v21, %v372_v20 }
 0x1d0   :  { %v378_v10 = vadd.s32 536870912, %v377_v22 }
 0x1d2   :  { %v379_v23 = vshrl.u32 %v378_v10, 30 }
 0x1d4   :  { %v380_v24 = vshll.u32 %v379_v23, 30  ;;  %v403_v43 = vsub.s32 4, %v379_v23 }
 0x1d6   :  { %v381_v11 = vsub.s32 %v377_v22, %v380_v24  ;;  %v404_v49 = vsel %vm281_vm8, %v403_v43, %v379_v23  ;;  %v23_v43 = vld [vmem:[%s998_s1] sm:$0x3] }
 0x1d7   :  { %v406_v4 = vsel %vm280_vm9, 0, %v404_v49 }
 0x1d8   :  { %vm382_vm6 = vcmp.lt.s32.totalorder %v381_v11, 0  ;;  %v383_v25 = vsub.s32 0, %v381_v11  ;;  %v423_v60 = vadd.s32 3, %v406_v4  ;;  %v578_v63 = vand.u32 3, %v406_v4 }
 0x1da   :  { %v384_v26 = vsel %vm382_vm6, %v383_v25, %v381_v11  ;;  %v424_v0 = vand.u32 3, %v423_v60  ;;  %vm579_vm10 = vcmp.lt.s32.totalorder %v578_v63, 2  ;;  %vm580_vm11 = vcmp.eq.s32.totalorder %v578_v63, 0 }
 0x1db   :  { %v385_v27 = vclz %v384_v26  ;;  %vm583_vm15 = vcmp.eq.s32.totalorder %v578_v63, 2 }
 0x1dc   :  { %vm425_vm12 = vcmp.lt.s32.totalorder %v424_v0, 2  ;;  %vm426_vm13 = vcmp.eq.s32.totalorder %v424_v0, 0  ;;  %vm429_vm14 = vcmp.eq.s32.totalorder %v424_v0, 2 }
 0x1dd   :  { %v691_v28 = vadd.s32 4294967294, %v385_v27 }
 0x1df   :  { %vm692_vm7 = vcmp.lt.s32.totalorder %v691_v28, 0 }
 0x1e0   :  { %v388_v29 = vsel %vm692_vm7, 0, %v691_v28 }
 0x1e1   :  { %v389_v14 = vsub.s32 32, %v388_v29  ;;  %v393_v30 = vsub.s32 4294967266, %v388_v29  ;;  %v390_v16 = vshll.u32 %v381_v11, %v388_v29 }
 0x1e3   :  { %v391_v19 = vshrl.u32 %v373_v55, %v389_v14  ;;  %v394_v31 = vadd.s32 127, %v393_v30 }
 0x1e5   :  { %v392_v17 = vor.u32 %v391_v19, %v390_v16  ;;  %v395_v32 = vshll.u32 %v394_v31, 23 }
 0x1e7   :  { %v396_v33 = vor.u32 4788187, %v395_v32  ;;  %v399_v35 = vcvt.s32.f32 %v392_v17 }
 0x1e9   :  { %v397_v34 = vand.u32 2147483647, %v396_v33 }
 0x1eb   :  { %v400_v37 = vmul.f32 %v399_v35, %v397_v34 }
 0x1ed   :  { %v401_v40 = vxor.u32 2147483648, %v400_v37 }
 0x1ef   :  { %v402_v42 = vsel %vm281_vm8, %v401_v40, %v400_v37 }
 0x1f0   :  { %v405_v44 = vsel %vm280_vm9, %v896_v46, %v402_v42 }
 0x1f1   :  { %v407_v45 = vmul.f32 %v405_v44, %v405_v44 }
 0x1f3   :  { %v408_v47 = vmul.f32 -0.001358992, %v407_v45  ;;  %v415_v48 = vmul.f32 -0.00019511016, %v407_v45 }
 0x1f5   :  { %v409_v52 = vadd.f32 0.041655596, %v408_v47  ;;  %v416_v53 = vadd.f32 0.008332121, %v415_v48  ;;  %v25_v47 = vsub.f32 %v843_v12, %v23_v43 }
 0x1f7   :  { %v410_v54 = vmul.f32 %v409_v52, %v407_v45  ;;  %v417_v41 = vmul.f32 %v416_v53, %v407_v45  ;;  %v27_v52 = vand.u32 2147483647, %v25_v47 }
 0x1f9   :  { %v411_v57 = vadd.f32 -0.4999988, %v410_v54  ;;  %v418_v58 = vadd.f32 -0.16666654, %v417_v41 }
 0x1fb   :  { %v412_v61 = vmul.f32 %v411_v57, %v407_v45  ;;  %v419_v62 = vmul.f32 %v418_v58, %v407_v45 }
 0x1fd   :  { %v413_v38 = vadd.f32 1.0, %v412_v61  ;;  %v420_v50 = vadd.f32 1.0, %v419_v62 }
 0x1ff   :  { %v421_v1 = vmul.f32 %v420_v50, %v405_v44  ;;  %v430_v2 = vxor.u32 2147483648, %v413_v38  ;;  %v24_v44 = vld [vmem:[%s998_s1 + $0x2] sm:$0x3] }
 0x200   :  { %v26_v48 = vsub.f32 %v810_v36, %v24_v44 }
 0x201   :  { %v427_v3 = vxor.u32 2147483648, %v421_v1  ;;  %v431_v7 = vsel %vm429_vm14, %v430_v2, %v421_v1  ;;  %v585_v9 = vsel %vm583_vm15, %v430_v2, %v421_v1 }
 0x202   :  { %v28_v53 = vand.u32 2147483647, %v26_v48 }
 0x203   :  { %v428_v5 = vsel %vm426_vm13, %v413_v38, %v427_v3  ;;  %v582_v8 = vsel %vm580_vm11, %v413_v38, %v427_v3  ;;  %vm29_vm11 = vcmask 287744  }
 0x204   :  { %v432_v6 = vsel %vm425_vm12, %v428_v5, %v431_v7  ;;  %v586_v13 = vsel %vm579_vm10, %v582_v8, %v585_v9  ;;  %v30_v54 = vsel %vm29_vm11, %v27_v52, 0.0  ;;  %v31_v41 = vsel %vm29_vm11, %v28_v53, 0.0 }
 0x205   :  { %v956_v15 = vsel %vm422_vm0, nan, %v432_v6  ;;  %v958_v39 = vsel %vm422_vm0, nan, %v586_v13  ;;  %v32_v57 = vadd.f32 %v31_v41, %v30_v54 }
 0x206   :  { %v588_v56 = vand.u32 2147483647, %v958_v39  ;;  %v589_v18 = vand.u32 2147483647, %v956_v15  ;;  %vm635_vm1 = vcmp.ne.f32.partialorder %v958_v39, %v958_v39  ;;  %vm636_vm2 = vcmp.ne.f32.partialorder %v956_v15, %v956_v15 }
 0x207   :  { %vm966_vm3 = vmor %vm635_vm1, %vm636_vm2  ;;  %33 = vadd.xlane.f32.xlu0 %v32_v57  ;;  %vm631_vm13 = vcmp.lt.s32.totalorder %v958_v39, 0  ;;  %vm628_vm14 = vcmp.lt.f32.partialorder %v958_v39, 0.0  ;;  %vm633_vm15 = vcmp.eq.f32.partialorder %v956_v15, 0.0  ;;  %v646_v5 = vand.u32 2147483648, %v956_v15 }
 0x208   :  { %v591_v20 = vmax.f32 %v588_v56, %v589_v18  ;;  %vm641_vm4 = vcmp.eq.s32.totalorder %v588_v56, inf  ;;  %vm642_vm5 = vcmp.eq.s32.totalorder %v589_v18, inf  ;;  %v590_v28 = vmin.f32 %v588_v56, %v589_v18 }
 0x209   :  { %vm970_vm6 = vmand %vm641_vm4, %vm642_vm5  ;;  %vm625_vm12 = vcmp.gt.f32.partialorder %v589_v18, %v588_v56  ;;  %v632_v50 = vsel %vm631_vm13, 3.1415927, %v738_v51  ;;  %v640_v1 = vsel %vm628_vm14, 2.3561945, %v739_v59  ;;  %vm662_vm1 = vcmask 123904  }
 0x20a   :  { %721 = vrcp.f32 %v591_v20  ;;  %v603_v24 = vand.u32 2147483648, %v591_v20  ;;  %v601_v25 = vand.u32 2147483647, %v591_v20  ;;  %vm597_vm8 = vweird.f32 %v591_v20 }
 0x20c   :  { %v604_v27 = vor.u32 1.1754944e-38, %v603_v24  ;;  %vm602_vm10 = vcmp.eq.f32.partialorder %v601_v25, 8.507059e+37 }
 0x210   :  { %v722_v22 = vpop.eup %721 }
 0x211   :  { %v593_v10 = vmul.f32 %v722_v22, %v591_v20  ;;  %vm598_vm7 = vweird.f32 %v722_v22 }
 0x212   :  { %vm599_vm9 = vmor %vm597_vm8, %vm598_vm7 }
 0x213   :  { %v594_v23 = vsub.f32 1.0, %v593_v10 }
 0x215   :  { %v595_v11 = vmul.f32 %v722_v22, %v594_v23 }
 0x217   :  { %v596_v26 = vadd.f32 %v722_v22, %v595_v11 }
 0x219   :  { %v600_v29 = vsel %vm599_vm9, %v722_v22, %v596_v26 }
 0x21a   :  { %v605_v55 = vsel %vm602_vm10, %v604_v27, %v600_v29 }
 0x21b   :  { %v606_v14 = vmul.f32 %v605_v55, %v590_v28 }
 0x21d   :  { %v607_v30 = vmul.f32 %v606_v14, %v606_v14 }
 0x21f   :  { %v608_v16 = vmul.f32 0.002785687, %v607_v30 }
 0x220   :  { %v652_v8 = vpop.permute.xlu1 %651 }
 0x221   :  { %v609_v19 = vadd.f32 -0.015866, %v608_v16 }
 0x223   :  { %v610_v31 = vmul.f32 %v609_v19, %v607_v30 }
 0x225   :  { %v611_v17 = vadd.f32 0.04247222, %v610_v31 }
 0x227   :  { %v612_v32 = vmul.f32 %v611_v17, %v607_v30 }
 0x229   :  { %v613_v33 = vadd.f32 -0.074975304, %v612_v32 }
 0x22b   :  { %v614_v34 = vmul.f32 %v613_v33, %v607_v30 }
 0x22d   :  { %v615_v35 = vadd.f32 0.1064488, %v614_v34 }
 0x22f   :  { %v616_v37 = vmul.f32 %v615_v35, %v607_v30 }
 0x231   :  { %v617_v40 = vadd.f32 -0.14207031, %v616_v37 }
 0x233   :  { %v618_v42 = vmul.f32 %v617_v40, %v607_v30 }
 0x235   :  { %v619_v45 = vadd.f32 0.19993454, %v618_v42 }
 0x237   :  { %v620_v49 = vmul.f32 %v619_v45, %v607_v30 }
 0x239   :  { %v621_v4 = vadd.f32 -0.33333147, %v620_v49 }
 0x23b   :  { %v622_v58 = vmul.f32 %v621_v4, %v607_v30 }
 0x23d   :  { %v623_v60 = vmul.f32 %v622_v58, %v606_v14 }
 0x23f   :  { %v624_v61 = vadd.f32 %v623_v60, %v606_v14 }
 0x241   :  { %v626_v62 = vsub.f32 1.5707964, %v624_v61 }
 0x243   :  { %v627_v38 = vsel %vm625_vm12, %v626_v62, %v624_v61 }
 0x244   :  { %v629_v12 = vsub.f32 3.1415927, %v627_v38 }
 0x246   :  { %v630_v36 = vsel %vm628_vm14, %v629_v12, %v627_v38 }
 0x247   :  { %v634_v63 = vsel %vm633_vm15, %v632_v50, %v630_v36 }
 0x248   :  { %v638_v0 = vsel %vm966_vm3, nan, %v634_v63 }
 0x249   :  { %v644_v2 = vsel %vm970_vm6, %v640_v1, %v638_v0 }
 0x24a   :  { %v645_v3 = vand.u32 2147483647, %v644_v2 }
 0x24c   :  { %v647_v7 = vor.u32 %v646_v5, %v645_v3 }
 0x24e   :  { %v648_v9 = vand.u32 2147483647, %v647_v7 }
 0x250   :  { %vm654_vm0 = vcmp.gt.f32.partialorder %v648_v9, %v652_v8 }
 0x251   :  { %v696_v6 = vsel %vm654_vm0, 1.0, %v738_v51 }
 0x252   :  { %v657_v13 = vmul.f32 %v696_v6, %v648_v9 }
 0x254   :  { %659 = vrot.lane.b32.xlu2 %v657_v13, %s741_s24 }
 0x27a   :  { %v34_v59 = vpop.xlane.xlu0 %33 }
 0x27b   :  { %v35_v18 = vrot.slane %v34_v59, 4 }
 0x27d   :  { %v36_v20 = vadd.f32 %v35_v18, %v34_v59 }
 0x27f   :  { %v37_v21 = vrot.slane %v36_v20, 2 }
 0x281   :  { %v38_v46 = vadd.f32 %v37_v21, %v36_v20 }
 0x283   :  { %v39_v22 = vrot.slane %v38_v46, 1 }
 0x285   :  { %v40_v15 = vadd.f32 %v39_v22, %v38_v46 }
 0x287   :  { %697 = vpush %v40_v15 }
 0x2ae   :  { %v660_v39 = vpop.permute.xlu2 %659 }
 0x2af   :  { %v663_v56 = vsel %vm662_vm1, %v660_v39, 0.0 }
 0x2b0   :  { %664 = vadd.xlane.f32.xlu1 %v663_v56 }
 0x2b8   :  { %s698_s1 = spop %697 }
 0x2b9   :  { %43 = sst [smem:[#allocation2]] %s698_s1 }
 0x323   :  { %v665_v10 = vpop.xlane.xlu1 %664 }
 0x324   :  { %v666_v23 = vrot.slane %v665_v10, 4 }
 0x326   :  { %v667_v24 = vadd.f32 %v666_v23, %v665_v10 }
 0x328   :  { %v668_v11 = vrot.slane %v667_v24, 2 }
 0x32a   :  { %v669_v51 = vadd.f32 %v668_v11, %v667_v24 }
 0x32c   :  { %v670_v25 = vrot.slane %v669_v51, 1 }
 0x32e   :  { %v671_v26 = vadd.f32 %v670_v25, %v669_v51 }
 0x330   :  { %699 = vpush %v671_v26 }
 0x361   :  { %s700_s10 = spop %699 }
 0x362   :  { %674 = sst [smem:[#allocation2 + $0x1]] %s700_s10 }
 0x363   :  { %683 = dma.smem_to_vmem %s750_s11, 16, %s681_s9, [#allocation3]  }
 0x364   :  { %735 = dma.done.wait [#allocation3], 16  }
 0x365   :  { %736 = vsyncadd [#allocation3], 4294967280 }
 0x366   :  { %688 = sfence }
 0x367   :  { %689 = vsyncpa [#allocation3], 1 }

</bundles_post_ra>
